<compile_context>
chip_gen: v6e
topology: v6e:2x2x1
jax: 0.10.0
libtpu: 0.0.40
codegen_flags: <defaults>
</compile_context>

<pallas_src>
import functools
import math

import jax
import jax.numpy as jnp
from jax.experimental import pallas as pl
from jax.experimental.pallas import tpu as pltpu


# --------------------------------------------------------------------------------------
# Kernel A: per-head Q/K/V projections (computed once for the whole sequence)
# --------------------------------------------------------------------------------------
def qkv_projection_kernel(x_ref, wq_ref, wk_ref, wv_ref, q_ref, k_ref, v_ref, *, num_heads):
    """x: (TR, D) f32; w*: (H, D, d) bf16 (scale folded into wq); outputs (H, TR, d) bf16."""
    xb = x_ref[...].astype(jnp.bfloat16)
    for h in range(num_heads):
        q_ref[h] = jnp.dot(xb, wq_ref[h], preferred_element_type=jnp.float32).astype(q_ref.dtype)
        k_ref[h] = jnp.dot(xb, wk_ref[h], preferred_element_type=jnp.float32).astype(k_ref.dtype)
        v_ref[h] = jnp.dot(xb, wv_ref[h], preferred_element_type=jnp.float32).astype(v_ref.dtype)


# --------------------------------------------------------------------------------------
# Kernel B: causal flash attention + residual/LN/FFN/LN, tiled over (q_tiles, kv_tiles)
# --------------------------------------------------------------------------------------
def attn_ffn_kernel(
    x_ref,            # (TN, D)       f32  residual / LayerNorm input tile
    q_ref,            # (H, TN, dqk)  bf16 (softmax scale pre-folded)
    k_ref,            # (H, TK, dqk)  bf16
    v_ref,            # (H, TK, dv)   bf16
    wo_ref,           # (H, dv, D)    bf16 output projection, per head
    g1_ref, b1_ref,   # (1, D)        f32  layernorm_1
    w1_ref,           # (D, F)        bf16 linear_1 weight
    fb1_ref,          # (1, F)        f32  linear_1 bias
    w2_ref,           # (F, D)        bf16 linear_2 weight
    fb2_ref,          # (1, D)        f32  linear_2 bias
    g2_ref, b2_ref,   # (1, D)        f32  layernorm_2
    out_ref,          # (TN, D)       f32  output tile
    m_sc,             # (H, TN, 1)    f32  running max
    l_sc,             # (H, TN, 1)    f32  running (unnormalized) denominator
    acc_sc,           # (H, TN, dv)   f32  running (unnormalized) context
    *, tn, tk,
):
    i = pl.program_id(0)
    j = pl.program_id(1)
    n_kv = pl.num_programs(1)

    q_start = i * tn
    q_last = q_start + tn - 1
    kv_start = j * tk

    @pl.when(j == 0)
    def _init():
        m_sc[...] = jnp.full_like(m_sc, -1e30)
        l_sc[...] = jnp.zeros_like(l_sc)
        acc_sc[...] = jnp.zeros_like(acc_sc)

    def accumulate(masked):
        # Head-batched QK^T: (H, TN, TK) in f32 on the MXU.
        s = jnp.einsum('hqd,hkd->hqk', q_ref[...], k_ref[...],
                       preferred_element_type=jnp.float32)
        if masked:  # only the diagonal tile pays for the additive causal bias
            row = jax.lax.broadcasted_iota(jnp.int32, (tn, tk), 0) + q_start
            col = jax.lax.broadcasted_iota(jnp.int32, (tn, tk), 1) + kv_start
            bias = jnp.where(col <= row, 0.0, -1e30).astype(jnp.float32)
            s = s + bias[None, :, :]
        m_prev = m_sc[...]
        m_new = jnp.maximum(m_prev, jnp.max(s, axis=-1, keepdims=True))
        alpha = jnp.exp(m_prev - m_new)
        p = jnp.exp(s - m_new)                                      # unnormalized weights
        l_sc[...] = alpha * l_sc[...] + jnp.sum(p, axis=-1, keepdims=True)
        pv = jnp.einsum('hqk,hkd->hqd', p.astype(jnp.bfloat16), v_ref[...],
                        preferred_element_type=jnp.float32)
        acc_sc[...] = alpha * acc_sc[...] + pv
        m_sc[...] = m_new

    # kv tile fully below the causal diagonal: no mask needed.
    @pl.when(kv_start + tk - 1 <= q_start)
    def _full_tile():
        accumulate(masked=False)

    # kv tile straddling the diagonal: apply the causal mask.
    @pl.when(jnp.logical_and(kv_start + tk - 1 > q_start, kv_start <= q_last))
    def _diag_tile():
        accumulate(masked=True)

    # kv tiles entirely above the diagonal fall through: no compute, no scratch update.

    @pl.when(j == n_kv - 1)
    def _finalize():
        eps = 1e-5
        # Deferred softmax normalization: one (H, TN, dv) multiply per q-tile (EUP recip).
        ctx = acc_sc[...] * pl.reciprocal(l_sc[...], approx=True)
        # Head-batched output projection; summing over heads == concat(heads) @ W_o,
        # so no lane-axis concatenation is ever materialized.
        mha = jnp.sum(
            jnp.einsum('hqv,hvd->hqd', ctx.astype(jnp.bfloat16), wo_ref[...],
                       preferred_element_type=jnp.float32),
            axis=0)                                                 # (TN, D)

        x_q = x_ref[...]
        h1 = x_q + mha
        mu1 = jnp.mean(h1, axis=-1, keepdims=True)
        var1 = jnp.mean((h1 - mu1) ** 2, axis=-1, keepdims=True)
        ln1 = (h1 - mu1) * jax.lax.rsqrt(var1 + eps) * g1_ref[...] + b1_ref[...]

        f = jnp.dot(ln1.astype(jnp.bfloat16), w1_ref[...],
                    preferred_element_type=jnp.float32) + fb1_ref[...]
        f = jnp.maximum(f, 0.0)
        f = jnp.dot(f.astype(jnp.bfloat16), w2_ref[...],
                    preferred_element_type=jnp.float32) + fb2_ref[...]
        f = jnp.maximum(f, 0.0)   # module's FeedForward applies ReLU after linear_2 too

        h2 = ln1 + f
        mu2 = jnp.mean(h2, axis=-1, keepdims=True)
        var2 = jnp.mean((h2 - mu2) ** 2, axis=-1, keepdims=True)
        out = (h2 - mu2) * jax.lax.rsqrt(var2 + eps) * g2_ref[...] + b2_ref[...]
        out_ref[...] = out.astype(out_ref.dtype)


# --------------------------------------------------------------------------------------
# Wrapper
# --------------------------------------------------------------------------------------
def _choose_tile(n, t):
    """Tile that divides N with an 8-aligned sublane dim; fall back to the full extent."""
    t = min(t, n)
    if n % t != 0 or t % 8 != 0:
        return n
    return t


def transformer_block(x, params, *, tile_q=256, tile_kv=512):
    """x: (N, D) float32.  params: dict from init_params.  Returns (N, D) float32."""
    N, D = x.shape
    H, _, dqk = params["wq"].shape
    dv = params["wv"].shape[2]
    F = params["ff_w1"].shape[1]
    bf, f32 = jnp.bfloat16, jnp.float32

    tn = _choose_tile(N, tile_q)
    tk = _choose_tile(N, tile_kv)

    # Host-side weight prep: fold the softmax scale into Wq, bf16 matmul operands,
    # regroup W_o per head so no in-kernel head concat is needed.
    scale = 1.0 / math.sqrt(dqk)
    wq = (params["wq"] * scale).astype(bf)            # (H, D, dqk)
    wk = params["wk"].astype(bf)                      # (H, D, dqk)
    wv = params["wv"].astype(bf)                      # (H, D, dv)
    wo = params["wo"].reshape(H, dv, D).astype(bf)    # (H*dv, D) -> (H, dv, D)
    w1 = params["ff_w1"].astype(bf)                   # (D, F)
    w2 = params["ff_w2"].astype(bf)                   # (F, D)

    # ---- pass 1: Q/K/V projections, computed exactly once over the sequence ----
    resident3 = lambda a: pl.BlockSpec(a.shape, lambda i: (0, 0, 0))
    q_all, k_all, v_all = pl.pallas_call(
        functools.partial(qkv_projection_kernel, num_heads=H),
        grid=(N // tn,),
        in_specs=[
            pl.BlockSpec((tn, D), lambda i: (i, 0)),
            resident3(wq), resident3(wk), resident3(wv),
        ],
        out_specs=[
            pl.BlockSpec((H, tn, dqk), lambda i: (0, i, 0)),
            pl.BlockSpec((H, tn, dqk), lambda i: (0, i, 0)),
            pl.BlockSpec((H, tn, dv), lambda i: (0, i, 0)),
        ],
        out_shape=[
            jax.ShapeDtypeStruct((H, N, dqk), bf),
            jax.ShapeDtypeStruct((H, N, dqk), bf),
            jax.ShapeDtypeStruct((H, N, dv), bf),
        ],
        compiler_params=pltpu.CompilerParams(dimension_semantics=("parallel",)),
        cost_estimate=pl.CostEstimate(
            flops=int(2 * N * D * H * (2 * dqk + dv)),
            transcendentals=0,
            bytes_accessed=int(N * D * 4 + 2 * (wq.size + wk.size + wv.size)
                               + 2 * H * N * (2 * dqk + dv)),
        ),
    )(x, wq, wk, wv)

    # ---- pass 2: causal flash attention + residual/LN/FFN/LN ----
    n_q, n_kv = N // tn, N // tk

    def kv_map(i, j):
        # Clamp to the last kv block that can contribute to q-tile i: fully masked steps
        # then revisit the same block and Pallas skips the redundant DMA.
        j_needed = (i * tn + tn - 1) // tk
        return (0, jnp.minimum(j, j_needed), 0)

    resident2 = lambda a: pl.BlockSpec(a.shape, lambda i, j: (0, 0))

    # VMEM budget: resident bf16 weights + double-buffered tiles + scratch + headroom,
    # clamped under the v7x 64 MiB per-core capacity.
    resident_bytes = int(wo.size * 2 + w1.size * 2 + w2.size * 2 + (6 * D + 2 * F) * 4)
    tile_bytes = int(2 * tn * D * 4 + H * tn * dqk * 2 + H * tk * (dqk + dv) * 2)
    scratch_bytes = int(H * tn * (dv + 2) * 4)
    vmem_limit = int(min(max(resident_bytes + 2 * tile_bytes + scratch_bytes + (8 << 20),
                             16 << 20), 48 << 20))

    avg_kv = (N + tk) // 2   # causal: ~half the keys per query (incl. diagonal-tile overhang)
    cost_b = pl.CostEstimate(
        flops=int(2 * H * N * avg_kv * (dqk + dv) + 2 * N * H * dv * D + 4 * N * D * F),
        transcendentals=int(H * N * avg_kv),
        bytes_accessed=int(2 * N * D * 4 + 2 * H * N * dqk
                           + max(1, (n_q + 1) // 2) * 2 * H * N * (dqk + dv)
                           + resident_bytes),
    )

    return pl.pallas_call(
        functools.partial(attn_ffn_kernel, tn=tn, tk=tk),
        out_shape=jax.ShapeDtypeStruct((N, D), f32),
        grid=(n_q, n_kv),
        in_specs=[
            pl.BlockSpec((tn, D), lambda i, j: (i, 0)),          # x (residual path)
            pl.BlockSpec((H, tn, dqk), lambda i, j: (0, i, 0)),  # q
            pl.BlockSpec((H, tk, dqk), kv_map),                  # k
            pl.BlockSpec((H, tk, dv), kv_map),                   # v
            pl.BlockSpec((H, dv, D), lambda i, j: (0, 0, 0)),    # w_o (resident)
            resident2(params["ln1_g"]), resident2(params["ln1_b"]),
            resident2(w1), resident2(params["ff_b1"]),
            resident2(w2), resident2(params["ff_b2"]),
            resident2(params["ln2_g"]), resident2(params["ln2_b"]),
        ],
        # TODO(synk): with D < 128 (as in the test) every out store is a masked partial
        # store; for deployments with small D a wrapper-side lane-dense repack would help.
        out_specs=pl.BlockSpec((tn, D), lambda i, j: (i, 0)),
        scratch_shapes=[
            pltpu.VMEM((H, tn, 1), f32),    # running max
            pltpu.VMEM((H, tn, 1), f32),    # running denominator (unnormalized)
            pltpu.VMEM((H, tn, dv), f32),   # running context accumulator (unnormalized)
        ],
        compiler_params=pltpu.CompilerParams(
            dimension_semantics=("parallel", "arbitrary"),
            vmem_limit_bytes=vmem_limit,
        ),
        cost_estimate=cost_b,
    )(x, q_all, k_all, v_all, wo,
      params["ln1_g"], params["ln1_b"],
      w1, params["ff_b1"], w2, params["ff_b2"],
      params["ln2_g"], params["ln2_b"])


# --------------------------------------------------------------------------------------
# Parameters & pure-JAX reference
# --------------------------------------------------------------------------------------
def init_params(key, num_heads, input_dim, query_key_dim, value_dim, feedforward_dim):
    ks = jax.random.split(key, 8)
    # SelfAttention / MultiHeadAttention weights (torch.randn equivalents), per-head layout.
    wq = jax.random.normal(ks[0], (num_heads, input_dim, query_key_dim), jnp.float32)
    wk = jax.random.normal(ks[1], (num_heads, input_dim, query_key_dim), jnp.float32)
    wv = jax.random.normal(ks[2], (num_heads, input_dim, value_dim), jnp.float32)
    wo = jax.random.normal(ks[3], (num_heads * value_dim, input_dim), jnp.float32)
    # FeedForward linear layers (weights stored transposed: (in, out)); modest scale.
    w1 = jax.random.normal(ks[4], (input_dim, feedforward_dim), jnp.float32) / math.sqrt(input_dim)
    b1 = jax.random.normal(ks[5], (1, feedforward_dim), jnp.float32) * 0.01
    w2 = jax.random.normal(ks[6], (feedforward_dim, input_dim), jnp.float32) / math.sqrt(feedforward_dim)
    b2 = jax.random.normal(ks[7], (1, input_dim), jnp.float32) * 0.01
    # LayerNorm affine params (torch default init: gamma=1, beta=0).
    ln_g = jnp.ones((1, input_dim), jnp.float32)
    ln_b = jnp.zeros((1, input_dim), jnp.float32)
    return dict(
        wq=wq, wk=wk, wv=wv, wo=wo,
        ln1_g=ln_g, ln1_b=ln_b,
        ff_w1=w1, ff_b1=b1, ff_w2=w2, ff_b2=b2,
        ln2_g=ln_g, ln2_b=ln_b,
    )


def transformer_block_ref(x, params):
    """Pure-JAX reference mirroring the module math with the kernel's bf16-operand /
    f32-accumulate scheme (LayerNorm / softmax statistics in f32)."""
    N, D = x.shape
    H, _, dqk = params["wq"].shape
    dv = params["wv"].shape[2]
    bf, f32 = jnp.bfloat16, jnp.float32
    scale = 1.0 / math.sqrt(dqk)

    wq = (params["wq"] * scale).astype(bf)
    wk = params["wk"].astype(bf)
    wv = params["wv"].astype(bf)
    wo = params["wo"].astype(bf)
    xb = x.astype(bf)

    mask = jnp.tril(jnp.ones((N, N), bool))
    ctxs = []
    for h in range(H):
        q = jnp.dot(xb, wq[h], preferred_element_type=f32).astype(bf)
        k = jnp.dot(xb, wk[h], preferred_element_type=f32).astype(bf)
        v = jnp.dot(xb, wv[h], preferred_element_type=f32).astype(bf)
        s = jnp.dot(q, k.T, preferred_element_type=f32)
        s = jnp.where(mask, s, -1e30)
        m = jnp.max(s, axis=-1, keepdims=True)
        p = jnp.exp(s - m)
        l = jnp.sum(p, axis=-1, keepdims=True)
        ctxs.append(jnp.dot(p.astype(bf), v, preferred_element_type=f32) / l)
    mha = jnp.dot(jnp.concatenate(ctxs, axis=-1).astype(bf), wo, preferred_element_type=f32)

    def ln(y, g, b):
        mu = jnp.mean(y, -1, keepdims=True)
        var = jnp.mean((y - mu) ** 2, -1, keepdims=True)
        return (y - mu) * jax.lax.rsqrt(var + 1e-5) * g + b

    h1 = ln(x + mha, params["ln1_g"], params["ln1_b"])
    f = jnp.maximum(jnp.dot(h1.astype(bf), params["ff_w1"].astype(bf),
                            preferred_element_type=f32) + params["ff_b1"], 0.0)
    f = jnp.maximum(jnp.dot(f.astype(bf), params["ff_w2"].astype(bf),
                            preferred_element_type=f32) + params["ff_b2"], 0.0)
    return ln(h1 + f, params["ln2_g"], params["ln2_b"])


if __name__ == "__main__":
    num_heads = 4
    input_dim = 32
    query_key_dim = 16
    value_dim = 16
    feedforward_dim = 64
    seq = 64            # small; tile_q=tile_kv=32 exercises the 2x2 causal-skipping grid

    key = jax.random.PRNGKey(0)
    kx, kp = jax.random.split(key)
    x = jax.random.normal(kx, (seq, input_dim), jnp.float32)
    params = init_params(kp, num_heads, input_dim, query_key_dim, value_dim, feedforward_dim)

    out = transformer_block(x, params, tile_q=32, tile_kv=32)   # deployments: 256 / 512
    out = jax.block_until_ready(out)

    ref = transformer_block_ref(x, params)
    assert out.shape == (seq, input_dim)
    assert bool(jnp.isfinite(out).all()), "non-finite values in Pallas output"
    max_err = float(jnp.max(jnp.abs(out - ref)))
    assert jnp.allclose(out, ref, atol=2e-2, rtol=2e-2), (
        f"Pallas output mismatch vs JAX reference (max abs err {max_err})")

    print("KERNEL_OK")
</pallas_src>

<mosaic_0001>
module attributes {stable_mosaic.version = 11 : i64} {
  func.func @qkv_projection_kernel(%arg0: i32, %arg1: memref<32x32xf32, #tpu.memory_space<vmem>>, %arg2: memref<4x32x16xbf16, #tpu.memory_space<vmem>>, %arg3: memref<4x32x16xbf16, #tpu.memory_space<vmem>>, %arg4: memref<4x32x16xbf16, #tpu.memory_space<vmem>>, %arg5: memref<4x32x16xbf16, #tpu.memory_space<vmem>>, %arg6: memref<4x32x16xbf16, #tpu.memory_space<vmem>>, %arg7: memref<4x32x16xbf16, #tpu.memory_space<vmem>>) attributes {dimension_semantics = [#tpu.dimension_semantics<parallel>], iteration_bounds = array<i64: 2>, scalar_prefetch = 0 : i64, scratch_operands = 0 : i64, tpu.core_type = #tpu.core_type<tc>, window_params = [{transform_indices = @transform_0, window_bounds = array<i64: 32, 32>}, {pipeline_mode = #tpu.pipeline_mode<synchronous>, transform_indices = @transform_1, window_bounds = array<i64: 4, 32, 16>}, {pipeline_mode = #tpu.pipeline_mode<synchronous>, transform_indices = @transform_2, window_bounds = array<i64: 4, 32, 16>}, {pipeline_mode = #tpu.pipeline_mode<synchronous>, transform_indices = @transform_3, window_bounds = array<i64: 4, 32, 16>}, {transform_indices = @transform_4, window_bounds = array<i64: 4, 32, 16>}, {transform_indices = @transform_5, window_bounds = array<i64: 4, 32, 16>}, {transform_indices = @transform_6, window_bounds = array<i64: 4, 32, 16>}]} {
    %c0 = arith.constant 0 : index
    %c0_0 = arith.constant 0 : index
    %0 = vector.load %arg1[%c0, %c0_0] : memref<32x32xf32, #tpu.memory_space<vmem>>, vector<32x32xf32>
    %1 = arith.truncf %0 : vector<32x32xf32> to vector<32x32xbf16>
    %c0_1 = arith.constant 0 : index
    %c0_2 = arith.constant 0 : index
    %c0_3 = arith.constant 0 : index
    %2 = vector.load %arg2[%c0_1, %c0_2, %c0_3] : memref<4x32x16xbf16, #tpu.memory_space<vmem>>, vector<1x32x16xbf16>
    %3 = vector.shape_cast %2 : vector<1x32x16xbf16> to vector<32x16xbf16>
    %cst = arith.constant dense<0.000000e+00> : vector<32x16xf32>
    %4 = tpu.matmul %1, %3, %cst {dimension_numbers = #tpu.dot_dimension_numbers<[1], [0], [0], [1], [0, 0, 1, 1], [], []>} : vector<32x32xbf16>, vector<32x16xbf16>, vector<32x16xf32> -> vector<32x16xf32>
    %5 = arith.truncf %4 : vector<32x16xf32> to vector<32x16xbf16>
    %c0_4 = arith.constant 0 : index
    %c0_5 = arith.constant 0 : index
    %c0_6 = arith.constant 0 : index
    %6 = vector.load %arg5[%c0_4, %c0_5, %c0_6] : memref<4x32x16xbf16, #tpu.memory_space<vmem>>, vector<1x32x16xbf16>
    %7 = vector.shape_cast %6 : vector<1x32x16xbf16> to vector<32x16xbf16>
    %8 = vector.shape_cast %5 : vector<32x16xbf16> to vector<1x32x16xbf16>
    tpu.vector_store %arg5[%c0_4, %c0_5, %c0_6], %8 {strides = array<i32>} : memref<4x32x16xbf16, #tpu.memory_space<vmem>>, vector<1x32x16xbf16>,
    %c0_7 = arith.constant 0 : index
    %c0_8 = arith.constant 0 : index
    %c0_9 = arith.constant 0 : index
    %9 = vector.load %arg3[%c0_7, %c0_8, %c0_9] : memref<4x32x16xbf16, #tpu.memory_space<vmem>>, vector<1x32x16xbf16>
    %10 = vector.shape_cast %9 : vector<1x32x16xbf16> to vector<32x16xbf16>
    %cst_10 = arith.constant dense<0.000000e+00> : vector<32x16xf32>
    %11 = tpu.matmul %1, %10, %cst_10 {dimension_numbers = #tpu.dot_dimension_numbers<[1], [0], [0], [1], [0, 0, 1, 1], [], []>} : vector<32x32xbf16>, vector<32x16xbf16>, vector<32x16xf32> -> vector<32x16xf32>
    %12 = arith.truncf %11 : vector<32x16xf32> to vector<32x16xbf16>
    %c0_11 = arith.constant 0 : index
    %c0_12 = arith.constant 0 : index
    %c0_13 = arith.constant 0 : index
    %13 = vector.load %arg6[%c0_11, %c0_12, %c0_13] : memref<4x32x16xbf16, #tpu.memory_space<vmem>>, vector<1x32x16xbf16>
    %14 = vector.shape_cast %13 : vector<1x32x16xbf16> to vector<32x16xbf16>
    %15 = vector.shape_cast %12 : vector<32x16xbf16> to vector<1x32x16xbf16>
    tpu.vector_store %arg6[%c0_11, %c0_12, %c0_13], %15 {strides = array<i32>} : memref<4x32x16xbf16, #tpu.memory_space<vmem>>, vector<1x32x16xbf16>,
    %c0_14 = arith.constant 0 : index
    %c0_15 = arith.constant 0 : index
    %c0_16 = arith.constant 0 : index
    %16 = vector.load %arg4[%c0_14, %c0_15, %c0_16] : memref<4x32x16xbf16, #tpu.memory_space<vmem>>, vector<1x32x16xbf16>
    %17 = vector.shape_cast %16 : vector<1x32x16xbf16> to vector<32x16xbf16>
    %cst_17 = arith.constant dense<0.000000e+00> : vector<32x16xf32>
    %18 = tpu.matmul %1, %17, %cst_17 {dimension_numbers = #tpu.dot_dimension_numbers<[1], [0], [0], [1], [0, 0, 1, 1], [], []>} : vector<32x32xbf16>, vector<32x16xbf16>, vector<32x16xf32> -> vector<32x16xf32>
    %19 = arith.truncf %18 : vector<32x16xf32> to vector<32x16xbf16>
    %c0_18 = arith.constant 0 : index
    %c0_19 = arith.constant 0 : index
    %c0_20 = arith.constant 0 : index
    %20 = vector.load %arg7[%c0_18, %c0_19, %c0_20] : memref<4x32x16xbf16, #tpu.memory_space<vmem>>, vector<1x32x16xbf16>
    %21 = vector.shape_cast %20 : vector<1x32x16xbf16> to vector<32x16xbf16>
    %22 = vector.shape_cast %19 : vector<32x16xbf16> to vector<1x32x16xbf16>
    tpu.vector_store %arg7[%c0_18, %c0_19, %c0_20], %22 {strides = array<i32>} : memref<4x32x16xbf16, #tpu.memory_space<vmem>>, vector<1x32x16xbf16>,
    %c1 = arith.constant 1 : index
    %c0_21 = arith.constant 0 : index
    %c0_22 = arith.constant 0 : index
    %23 = vector.load %arg2[%c1, %c0_21, %c0_22] : memref<4x32x16xbf16, #tpu.memory_space<vmem>>, vector<1x32x16xbf16>
    %24 = vector.shape_cast %23 : vector<1x32x16xbf16> to vector<32x16xbf16>
    %cst_23 = arith.constant dense<0.000000e+00> : vector<32x16xf32>
    %25 = tpu.matmul %1, %24, %cst_23 {dimension_numbers = #tpu.dot_dimension_numbers<[1], [0], [0], [1], [0, 0, 1, 1], [], []>} : vector<32x32xbf16>, vector<32x16xbf16>, vector<32x16xf32> -> vector<32x16xf32>
    %26 = arith.truncf %25 : vector<32x16xf32> to vector<32x16xbf16>
    %c1_24 = arith.constant 1 : index
    %c0_25 = arith.constant 0 : index
    %c0_26 = arith.constant 0 : index
    %27 = vector.load %arg5[%c1_24, %c0_25, %c0_26] : memref<4x32x16xbf16, #tpu.memory_space<vmem>>, vector<1x32x16xbf16>
    %28 = vector.shape_cast %27 : vector<1x32x16xbf16> to vector<32x16xbf16>
    %29 = vector.shape_cast %26 : vector<32x16xbf16> to vector<1x32x16xbf16>
    tpu.vector_store %arg5[%c1_24, %c0_25, %c0_26], %29 {strides = array<i32>} : memref<4x32x16xbf16, #tpu.memory_space<vmem>>, vector<1x32x16xbf16>,
    %c1_27 = arith.constant 1 : index
    %c0_28 = arith.constant 0 : index
    %c0_29 = arith.constant 0 : index
    %30 = vector.load %arg3[%c1_27, %c0_28, %c0_29] : memref<4x32x16xbf16, #tpu.memory_space<vmem>>, vector<1x32x16xbf16>
    %31 = vector.shape_cast %30 : vector<1x32x16xbf16> to vector<32x16xbf16>
    %cst_30 = arith.constant dense<0.000000e+00> : vector<32x16xf32>
    %32 = tpu.matmul %1, %31, %cst_30 {dimension_numbers = #tpu.dot_dimension_numbers<[1], [0], [0], [1], [0, 0, 1, 1], [], []>} : vector<32x32xbf16>, vector<32x16xbf16>, vector<32x16xf32> -> vector<32x16xf32>
    %33 = arith.truncf %32 : vector<32x16xf32> to vector<32x16xbf16>
    %c1_31 = arith.constant 1 : index
    %c0_32 = arith.constant 0 : index
    %c0_33 = arith.constant 0 : index
    %34 = vector.load %arg6[%c1_31, %c0_32, %c0_33] : memref<4x32x16xbf16, #tpu.memory_space<vmem>>, vector<1x32x16xbf16>
    %35 = vector.shape_cast %34 : vector<1x32x16xbf16> to vector<32x16xbf16>
    %36 = vector.shape_cast %33 : vector<32x16xbf16> to vector<1x32x16xbf16>
    tpu.vector_store %arg6[%c1_31, %c0_32, %c0_33], %36 {strides = array<i32>} : memref<4x32x16xbf16, #tpu.memory_space<vmem>>, vector<1x32x16xbf16>,
    %c1_34 = arith.constant 1 : index
    %c0_35 = arith.constant 0 : index
    %c0_36 = arith.constant 0 : index
    %37 = vector.load %arg4[%c1_34, %c0_35, %c0_36] : memref<4x32x16xbf16, #tpu.memory_space<vmem>>, vector<1x32x16xbf16>
    %38 = vector.shape_cast %37 : vector<1x32x16xbf16> to vector<32x16xbf16>
    %cst_37 = arith.constant dense<0.000000e+00> : vector<32x16xf32>
    %39 = tpu.matmul %1, %38, %cst_37 {dimension_numbers = #tpu.dot_dimension_numbers<[1], [0], [0], [1], [0, 0, 1, 1], [], []>} : vector<32x32xbf16>, vector<32x16xbf16>, vector<32x16xf32> -> vector<32x16xf32>
    %40 = arith.truncf %39 : vector<32x16xf32> to vector<32x16xbf16>
    %c1_38 = arith.constant 1 : index
    %c0_39 = arith.constant 0 : index
    %c0_40 = arith.constant 0 : index
    %41 = vector.load %arg7[%c1_38, %c0_39, %c0_40] : memref<4x32x16xbf16, #tpu.memory_space<vmem>>, vector<1x32x16xbf16>
    %42 = vector.shape_cast %41 : vector<1x32x16xbf16> to vector<32x16xbf16>
    %43 = vector.shape_cast %40 : vector<32x16xbf16> to vector<1x32x16xbf16>
    tpu.vector_store %arg7[%c1_38, %c0_39, %c0_40], %43 {strides = array<i32>} : memref<4x32x16xbf16, #tpu.memory_space<vmem>>, vector<1x32x16xbf16>,
    %c2 = arith.constant 2 : index
    %c0_41 = arith.constant 0 : index
    %c0_42 = arith.constant 0 : index
    %44 = vector.load %arg2[%c2, %c0_41, %c0_42] : memref<4x32x16xbf16, #tpu.memory_space<vmem>>, vector<1x32x16xbf16>
    %45 = vector.shape_cast %44 : vector<1x32x16xbf16> to vector<32x16xbf16>
    %cst_43 = arith.constant dense<0.000000e+00> : vector<32x16xf32>
    %46 = tpu.matmul %1, %45, %cst_43 {dimension_numbers = #tpu.dot_dimension_numbers<[1], [0], [0], [1], [0, 0, 1, 1], [], []>} : vector<32x32xbf16>, vector<32x16xbf16>, vector<32x16xf32> -> vector<32x16xf32>
    %47 = arith.truncf %46 : vector<32x16xf32> to vector<32x16xbf16>
    %c2_44 = arith.constant 2 : index
    %c0_45 = arith.constant 0 : index
    %c0_46 = arith.constant 0 : index
    %48 = vector.load %arg5[%c2_44, %c0_45, %c0_46] : memref<4x32x16xbf16, #tpu.memory_space<vmem>>, vector<1x32x16xbf16>
    %49 = vector.shape_cast %48 : vector<1x32x16xbf16> to vector<32x16xbf16>
    %50 = vector.shape_cast %47 : vector<32x16xbf16> to vector<1x32x16xbf16>
    tpu.vector_store %arg5[%c2_44, %c0_45, %c0_46], %50 {strides = array<i32>} : memref<4x32x16xbf16, #tpu.memory_space<vmem>>, vector<1x32x16xbf16>,
    %c2_47 = arith.constant 2 : index
    %c0_48 = arith.constant 0 : index
    %c0_49 = arith.constant 0 : index
    %51 = vector.load %arg3[%c2_47, %c0_48, %c0_49] : memref<4x32x16xbf16, #tpu.memory_space<vmem>>, vector<1x32x16xbf16>
    %52 = vector.shape_cast %51 : vector<1x32x16xbf16> to vector<32x16xbf16>
    %cst_50 = arith.constant dense<0.000000e+00> : vector<32x16xf32>
    %53 = tpu.matmul %1, %52, %cst_50 {dimension_numbers = #tpu.dot_dimension_numbers<[1], [0], [0], [1], [0, 0, 1, 1], [], []>} : vector<32x32xbf16>, vector<32x16xbf16>, vector<32x16xf32> -> vector<32x16xf32>
    %54 = arith.truncf %53 : vector<32x16xf32> to vector<32x16xbf16>
    %c2_51 = arith.constant 2 : index
    %c0_52 = arith.constant 0 : index
    %c0_53 = arith.constant 0 : index
    %55 = vector.load %arg6[%c2_51, %c0_52, %c0_53] : memref<4x32x16xbf16, #tpu.memory_space<vmem>>, vector<1x32x16xbf16>
    %56 = vector.shape_cast %55 : vector<1x32x16xbf16> to vector<32x16xbf16>
    %57 = vector.shape_cast %54 : vector<32x16xbf16> to vector<1x32x16xbf16>
    tpu.vector_store %arg6[%c2_51, %c0_52, %c0_53], %57 {strides = array<i32>} : memref<4x32x16xbf16, #tpu.memory_space<vmem>>, vector<1x32x16xbf16>,
    %c2_54 = arith.constant 2 : index
    %c0_55 = arith.constant 0 : index
    %c0_56 = arith.constant 0 : index
    %58 = vector.load %arg4[%c2_54, %c0_55, %c0_56] : memref<4x32x16xbf16, #tpu.memory_space<vmem>>, vector<1x32x16xbf16>
    %59 = vector.shape_cast %58 : vector<1x32x16xbf16> to vector<32x16xbf16>
    %cst_57 = arith.constant dense<0.000000e+00> : vector<32x16xf32>
    %60 = tpu.matmul %1, %59, %cst_57 {dimension_numbers = #tpu.dot_dimension_numbers<[1], [0], [0], [1], [0, 0, 1, 1], [], []>} : vector<32x32xbf16>, vector<32x16xbf16>, vector<32x16xf32> -> vector<32x16xf32>
    %61 = arith.truncf %60 : vector<32x16xf32> to vector<32x16xbf16>
    %c2_58 = arith.constant 2 : index
    %c0_59 = arith.constant 0 : index
    %c0_60 = arith.constant 0 : index
    %62 = vector.load %arg7[%c2_58, %c0_59, %c0_60] : memref<4x32x16xbf16, #tpu.memory_space<vmem>>, vector<1x32x16xbf16>
    %63 = vector.shape_cast %62 : vector<1x32x16xbf16> to vector<32x16xbf16>
    %64 = vector.shape_cast %61 : vector<32x16xbf16> to vector<1x32x16xbf16>
    tpu.vector_store %arg7[%c2_58, %c0_59, %c0_60], %64 {strides = array<i32>} : memref<4x32x16xbf16, #tpu.memory_space<vmem>>, vector<1x32x16xbf16>,
    %c3 = arith.constant 3 : index
    %c0_61 = arith.constant 0 : index
    %c0_62 = arith.constant 0 : index
    %65 = vector.load %arg2[%c3, %c0_61, %c0_62] : memref<4x32x16xbf16, #tpu.memory_space<vmem>>, vector<1x32x16xbf16>
    %66 = vector.shape_cast %65 : vector<1x32x16xbf16> to vector<32x16xbf16>
    %cst_63 = arith.constant dense<0.000000e+00> : vector<32x16xf32>
    %67 = tpu.matmul %1, %66, %cst_63 {dimension_numbers = #tpu.dot_dimension_numbers<[1], [0], [0], [1], [0, 0, 1, 1], [], []>} : vector<32x32xbf16>, vector<32x16xbf16>, vector<32x16xf32> -> vector<32x16xf32>
    %68 = arith.truncf %67 : vector<32x16xf32> to vector<32x16xbf16>
    %c3_64 = arith.constant 3 : index
    %c0_65 = arith.constant 0 : index
    %c0_66 = arith.constant 0 : index
    %69 = vector.load %arg5[%c3_64, %c0_65, %c0_66] : memref<4x32x16xbf16, #tpu.memory_space<vmem>>, vector<1x32x16xbf16>
    %70 = vector.shape_cast %69 : vector<1x32x16xbf16> to vector<32x16xbf16>
    %71 = vector.shape_cast %68 : vector<32x16xbf16> to vector<1x32x16xbf16>
    tpu.vector_store %arg5[%c3_64, %c0_65, %c0_66], %71 {strides = array<i32>} : memref<4x32x16xbf16, #tpu.memory_space<vmem>>, vector<1x32x16xbf16>,
    %c3_67 = arith.constant 3 : index
    %c0_68 = arith.constant 0 : index
    %c0_69 = arith.constant 0 : index
    %72 = vector.load %arg3[%c3_67, %c0_68, %c0_69] : memref<4x32x16xbf16, #tpu.memory_space<vmem>>, vector<1x32x16xbf16>
    %73 = vector.shape_cast %72 : vector<1x32x16xbf16> to vector<32x16xbf16>
    %cst_70 = arith.constant dense<0.000000e+00> : vector<32x16xf32>
    %74 = tpu.matmul %1, %73, %cst_70 {dimension_numbers = #tpu.dot_dimension_numbers<[1], [0], [0], [1], [0, 0, 1, 1], [], []>} : vector<32x32xbf16>, vector<32x16xbf16>, vector<32x16xf32> -> vector<32x16xf32>
    %75 = arith.truncf %74 : vector<32x16xf32> to vector<32x16xbf16>
    %c3_71 = arith.constant 3 : index
    %c0_72 = arith.constant 0 : index
    %c0_73 = arith.constant 0 : index
    %76 = vector.load %arg6[%c3_71, %c0_72, %c0_73] : memref<4x32x16xbf16, #tpu.memory_space<vmem>>, vector<1x32x16xbf16>
    %77 = vector.shape_cast %76 : vector<1x32x16xbf16> to vector<32x16xbf16>
    %78 = vector.shape_cast %75 : vector<32x16xbf16> to vector<1x32x16xbf16>
    tpu.vector_store %arg6[%c3_71, %c0_72, %c0_73], %78 {strides = array<i32>} : memref<4x32x16xbf16, #tpu.memory_space<vmem>>, vector<1x32x16xbf16>,
    %c3_74 = arith.constant 3 : index
    %c0_75 = arith.constant 0 : index
    %c0_76 = arith.constant 0 : index
    %79 = vector.load %arg4[%c3_74, %c0_75, %c0_76] : memref<4x32x16xbf16, #tpu.memory_space<vmem>>, vector<1x32x16xbf16>
    %80 = vector.shape_cast %79 : vector<1x32x16xbf16> to vector<32x16xbf16>
    %cst_77 = arith.constant dense<0.000000e+00> : vector<32x16xf32>
    %81 = tpu.matmul %1, %80, %cst_77 {dimension_numbers = #tpu.dot_dimension_numbers<[1], [0], [0], [1], [0, 0, 1, 1], [], []>} : vector<32x32xbf16>, vector<32x16xbf16>, vector<32x16xf32> -> vector<32x16xf32>
    %82 = arith.truncf %81 : vector<32x16xf32> to vector<32x16xbf16>
    %c3_78 = arith.constant 3 : index
    %c0_79 = arith.constant 0 : index
    %c0_80 = arith.constant 0 : index
    %83 = vector.load %arg7[%c3_78, %c0_79, %c0_80] : memref<4x32x16xbf16, #tpu.memory_space<vmem>>, vector<1x32x16xbf16>
    %84 = vector.shape_cast %83 : vector<1x32x16xbf16> to vector<32x16xbf16>
    %85 = vector.shape_cast %82 : vector<32x16xbf16> to vector<1x32x16xbf16>
    tpu.vector_store %arg7[%c3_78, %c0_79, %c0_80], %85 {strides = array<i32>} : memref<4x32x16xbf16, #tpu.memory_space<vmem>>, vector<1x32x16xbf16>,
    return
  }
  func.func @transform_0(%arg0: i32) -> (i32, i32) {
    %c0_i32 = arith.constant 0 : i32
    %c0_i32_0 = arith.constant 0 : i32
    return %arg0, %c0_i32 : i32, i32
  }
  func.func @transform_1(%arg0: i32) -> (i32, i32, i32) {
    %c0_i32 = arith.constant 0 : i32
    %c0_i32_0 = arith.constant 0 : i32
    %c0_i32_1 = arith.constant 0 : i32
    %c0_i32_2 = arith.constant 0 : i32
    return %c0_i32, %c0_i32_0, %c0_i32_1 : i32, i32, i32
  }
  func.func @transform_2(%arg0: i32) -> (i32, i32, i32) {
    %c0_i32 = arith.constant 0 : i32
    %c0_i32_0 = arith.constant 0 : i32
    %c0_i32_1 = arith.constant 0 : i32
    %c0_i32_2 = arith.constant 0 : i32
    return %c0_i32, %c0_i32_0, %c0_i32_1 : i32, i32, i32
  }
  func.func @transform_3(%arg0: i32) -> (i32, i32, i32) {
    %c0_i32 = arith.constant 0 : i32
    %c0_i32_0 = arith.constant 0 : i32
    %c0_i32_1 = arith.constant 0 : i32
    %c0_i32_2 = arith.constant 0 : i32
    return %c0_i32, %c0_i32_0, %c0_i32_1 : i32, i32, i32
  }
  func.func @transform_4(%arg0: i32) -> (i32, i32, i32) {
    %c0_i32 = arith.constant 0 : i32
    %c0_i32_0 = arith.constant 0 : i32
    %c0_i32_1 = arith.constant 0 : i32
    return %c0_i32, %arg0, %c0_i32_0 : i32, i32, i32
  }
  func.func @transform_5(%arg0: i32) -> (i32, i32, i32) {
    %c0_i32 = arith.constant 0 : i32
    %c0_i32_0 = arith.constant 0 : i32
    %c0_i32_1 = arith.constant 0 : i32
    return %c0_i32, %arg0, %c0_i32_0 : i32, i32, i32
  }
  func.func @transform_6(%arg0: i32) -> (i32, i32, i32) {
    %c0_i32 = arith.constant 0 : i32
    %c0_i32_0 = arith.constant 0 : i32
    %c0_i32_1 = arith.constant 0 : i32
    return %c0_i32, %arg0, %c0_i32_0 : i32, i32, i32
  }
}

</mosaic_0001>

<bundles_post_ra>
// kernel: tpu_custom_call.1
= control target key start
LH: loop header
LB: loop body
LE: loop exit
PB: predicated region body
PF: predicated region fallthrough
CT: control target
= control target key end

     0   :  { %s2247_s21 = smov 0   ;;  %s2249_s22 = smov 0   ;;  %s2564_s0 = inlined_call_operand.vmem [shape: f32[64,32], index: 0, kind: input, shape index: {}]   ;;  %s2565_s1 = inlined_call_operand.vmem [shape: bf16[4,32,16], index: 1, kind: input, shape index: {}]   ;;  %s2566_s2 = inlined_call_operand.vmem [shape: bf16[4,32,16], index: 2, kind: input, shape index: {}]   ;;  %s2567_s3 = inlined_call_operand.vmem [shape: bf16[4,32,16], index: 3, kind: input, shape index: {}]   ;;  %s2568_s4 = inlined_call_operand.vmem [shape: bf16[4,64,16], index: 4, kind: output, shape index: {0}]   ;;  %s2569_s5 = inlined_call_operand.vmem [shape: bf16[4,64,16], index: 5, kind: output, shape index: {1}]   ;;  %s2570_s6 = inlined_call_operand.vmem [shape: bf16[4,64,16], index: 6, kind: output, shape index: {2}]  }
   0x1   :  { %s2251_s23 = smov 0  }
   0x2 LB: > { %s2260_s24 = sadd.s32 4294967295, %s2210_s23   ;;  %s2262_s25 = sadd.s32 1, %s2210_s23   ;;  %s2210_s23 = sphi %s2251_s23, %s2574_s23   ;;  %s2206_s22 = sphi %s2249_s22, %s2573_s22   ;;  %s2202_s21 = sphi %s2247_s21, %s2572_s21  }
   0x3   : > { %s110_s26 = ssub.s32 %s2210_s23, %s2262_s25  ;;  %s113_s27 = sadd.s32 1, %s2206_s22 }
   0x4   : > { %p111_p0 = scmp.eq.s32.totalorder %s110_s26, 0  ;;  %p123_p1 = scmp.ne.s32.totalorder %s2206_s22, %s2202_s21 }
   0x5   : > { %p124_p2 = scmp.eq.s32.totalorder %s2260_s24, 1  ;;  %p1760_p3 = scmp.ge.s32.totalorder %s2210_s23, 1 }
   0x6   : > { %s2270_s28 = scalar_select %p111_p0, %s2206_s22, %s113_s27  }
   0x7   : > { %p2272_p4 = por %p124_p2, %p123_p1  ;;  %p218_p5 = scmp.lt.s32.totalorder %s2210_s23, 3 }
   0x9   : > { %p219_p6 = pnand %p1760_p3, %p218_p5 }
   0xa   : > { %s1764_s8 = sshll.u32 (!%p219_p6), %s2260_s24, 2  ;;  %s240_s27 = sand.u32 (!%p219_p6), 1, %s2202_s21  }
   0xb   : > { %222 = sbr.rel (%p219_p6) target bundleno = 281 (0x119), region = 36  ;;  %p256_p7 = scmp.lt.s32.totalorder (!%p219_p6), %s1764_s8, 7 }
   0xc   : > { %s2405_s30 = sshll.u32 (!%p219_p6), %s240_s27, 6 }
   0xd   : > { %s2408_s7 = scalar_lea.vmem (!%p219_p6), [#allocation2], %s2405_s30  ;;  %s2430_s21 = scalar_lea.vmem (!%p219_p6), [#allocation4], %s2405_s30 }
  0x10   : > { %v2164_v0 = vld [vmem:[%s2565_s1 + $0x8] sm:$0xff]   ;;  %v2166_v2 = vld [vmem:[%s2565_s1] sm:$0xff]   ;;  %s2576_s8 = smov (!%p256_p7, %s1764_s8), 7  ;;  %v2169_v5 = vld [vmem:[%s2565_s1 + $0x18] sm:$0xff]   ;;  %vm287_vm0 = vcmask 261120   ;;  %vm359_vm1 = vcmask 125952  }
  0x11   : > { %v2165_v1 = vld [vmem:[%s2566_s2 + $0x8] sm:$0xff]   ;;  %2044 = vmatprep.subr.bf16.mxu0 %v2164_v0  ;;  %v2167_v3 = vld [vmem:[%s2566_s2] sm:$0xff]   ;;  %s1765_s17 = sshll.u32 %s2576_s8, 3  ;;  %v2171_v13 = vld [vmem:[%s2565_s1 + $0x10] sm:$0xff]   ;;  %s2413_s8 = scalar_lea.vmem [#allocation3], %s2405_s30 }
  0x12   : > { %2052 = vmatprep.subr.bf16.mxu1 %v2165_v1  ;;  %2045 = vmatpush3.bf16.msra.mxu0 %v2164_v0  ;;  %v2168_v4 = vld [vmem:[%s2567_s3 + $0x8] sm:$0xff]   ;;  %s259_s26 = scalar_lea.vmem %s2564_s0, %s1765_s17  ;;  %v2170_v9 = vld [vmem:[%s2567_s3] sm:$0xff]   ;;  %v2172_v14 = vld [vmem:[%s2566_s2 + $0x18] sm:$0xff]   ;;  %s1993_s9 = sshll.u32 (%p2272_p4), %s2260_s24, 4 }
  0x13   : > { %2053 = vmatpush3.bf16.msra.mxu1 %v2165_v1  ;;  %2046 = vmatprep.subr.bf16.mxu0 %v2166_v2  ;;  %v265_v6 = vld [vmem:[%s259_s26] sm:$0xff]  ;;  %v266_v7 = vld [vmem:[%s259_s26 + $0x8] sm:$0xff]  ;;  %v267_v8 = vld [vmem:[%s259_s26 + $0x10] sm:$0xff]  ;;  %s1334_s12 = scalar_lea.vmem (%p2272_p4), %s2568_s4, %s1993_s9 }
  0x14   : > { %2054 = vmatprep.subr.bf16.mxu1 %v2167_v3  ;;  %v2301_v10 = vpack.c.bf16 %v266_v7, %v265_v6  ;;  %v268_v11 = vld [vmem:[%s259_s26 + $0x18] sm:$0xff]  ;;  %v2174_v16 = vld [vmem:[%s2566_s2 + $0x10] sm:$0xff]   ;;  %v2176_v18 = vld [vmem:[%s2565_s1 + $0x28] sm:$0xff]  }
  0x15   : > { %v2303_v12 = vpack.c.bf16 %v268_v11, %v267_v8  ;;  %v2173_v15 = vld [vmem:[%s2567_s3 + $0x18] sm:$0xff]   ;;  %v2175_v17 = vld [vmem:[%s2567_s3 + $0x10] sm:$0xff]   ;;  %v2177_v19 = vld [vmem:[%s2566_s2 + $0x28] sm:$0xff]  }
  0x16   : > { %2047 = vmatpush3.bf16.msra.mxu0 %v2166_v2  ;;  %2048 = vmatprep.mubr.msk.bf16.mxu0 %vm287_vm0, %v2301_v10  ;;  %v2178_v20 = vld [vmem:[%s2565_s1 + $0x20] sm:$0xff]   ;;  %v2180_v22 = vld [vmem:[%s2567_s3 + $0x28] sm:$0xff]   ;;  %v2181_v23 = vld [vmem:[%s2565_s1 + $0x38] sm:$0xff]  }
  0x17   : > { %2055 = vmatpush3.bf16.msra.mxu1 %v2167_v3  ;;  %2060 = vmatprep.subr.bf16.mxu0 %v2168_v4  ;;  %v2179_v21 = vld [vmem:[%s2566_s2 + $0x20] sm:$0xff]   ;;  %v2183_v25 = vld [vmem:[%s2565_s1 + $0x30] sm:$0xff]   ;;  %v2184_v26 = vld [vmem:[%s2566_s2 + $0x38] sm:$0xff]  }
  0x18   : > { %2068 = vmatprep.subr.bf16.mxu1 %v2169_v5  ;;  %2056 = vmatprep.mubr.msk.bf16.mxu1 %vm287_vm0, %v2301_v10  ;;  %v2182_v24 = vld [vmem:[%s2567_s3 + $0x20] sm:$0xff]   ;;  %v2185_v27 = vld [vmem:[%s2567_s3 + $0x38] sm:$0xff]   ;;  %v2186_v28 = vld [vmem:[%s2566_s2 + $0x30] sm:$0xff]  }
  0x19   : > { %2049 = vmatmul.mubr.msk.bf16.vlgmr.msra.gmra.mxu0 %vm287_vm0, %v2303_v12  ;;  %v2187_v29 = vld [vmem:[%s2567_s3 + $0x30] sm:$0xff]  }
  0x1a   : > { %2057 = vmatmul.mubr.msk.bf16.vlgmr.msra.gmra.mxu1 %vm287_vm0, %v2303_v12  ;;  %2061 = vmatpush3.bf16.msra.mxu0 %v2168_v4 }
  0x1b   : > { %2069 = vmatpush3.bf16.msra.mxu1 %v2169_v5  ;;  %2062 = vmatprep.subr.bf16.mxu0 %v2170_v9 }
  0x1c   : > { %2070 = vmatprep.subr.bf16.mxu1 %v2171_v13  ;;  %2064 = vmatprep.mubr.msk.bf16.mxu0 %vm287_vm0, %v2301_v10 }
  0x1d   : > { %2072 = vmatprep.mubr.msk.bf16.mxu1 %vm287_vm0, %v2301_v10 }
  0x1e   : > { %2063 = vmatpush3.bf16.msra.mxu0 %v2170_v9 }
  0x1f   : > { %2071 = vmatpush3.bf16.msra.mxu1 %v2171_v13  ;;  %2076 = vmatprep.subr.bf16.mxu0 %v2172_v14 }
  0x20   : > { %2084 = vmatprep.subr.bf16.mxu1 %v2173_v15 }
  0x21   : > { %2065 = vmatmul.mubr.msk.bf16.vlgmr.msra.gmra.mxu0 %vm287_vm0, %v2303_v12 }
  0x22   : > { %2073 = vmatmul.mubr.msk.bf16.vlgmr.msra.gmra.mxu1 %vm287_vm0, %v2303_v12  ;;  %2077 = vmatpush3.bf16.msra.mxu0 %v2172_v14 }
  0x23   : > { %2085 = vmatpush3.bf16.msra.mxu1 %v2173_v15  ;;  %2078 = vmatprep.subr.bf16.mxu0 %v2174_v16 }
  0x24   : > { %2086 = vmatprep.subr.bf16.mxu1 %v2175_v17  ;;  %2080 = vmatprep.mubr.msk.bf16.mxu0 %vm287_vm0, %v2301_v10 }
  0x25   : > { %2088 = vmatprep.mubr.msk.bf16.mxu1 %vm287_vm0, %v2301_v10 }
  0x26   : > { %2079 = vmatpush3.bf16.msra.mxu0 %v2174_v16 }
  0x27   : > { %2087 = vmatpush3.bf16.msra.mxu1 %v2175_v17  ;;  %2092 = vmatprep.subr.bf16.mxu0 %v2176_v18 }
  0x28   : > { %2100 = vmatprep.subr.bf16.mxu1 %v2177_v19 }
  0x29   : > { %2081 = vmatmul.mubr.msk.bf16.vlgmr.msra.gmra.mxu0 %vm287_vm0, %v2303_v12 }
  0x2a   : > { %2089 = vmatmul.mubr.msk.bf16.vlgmr.msra.gmra.mxu1 %vm287_vm0, %v2303_v12  ;;  %2093 = vmatpush3.bf16.msra.mxu0 %v2176_v18 }
  0x2b   : > { %2101 = vmatpush3.bf16.msra.mxu1 %v2177_v19  ;;  %2094 = vmatprep.subr.bf16.mxu0 %v2178_v20 }
  0x2c   : > { %2102 = vmatprep.subr.bf16.mxu1 %v2179_v21  ;;  %2096 = vmatprep.mubr.msk.bf16.mxu0 %vm287_vm0, %v2301_v10 }
  0x2d   : > { %2104 = vmatprep.mubr.msk.bf16.mxu1 %vm287_vm0, %v2301_v10 }
  0x2e   : > { %2095 = vmatpush3.bf16.msra.mxu0 %v2178_v20 }
  0x2f   : > { %2103 = vmatpush3.bf16.msra.mxu1 %v2179_v21  ;;  %2108 = vmatprep.subr.bf16.mxu0 %v2180_v22 }
  0x30   : > { %2116 = vmatprep.subr.bf16.mxu1 %v2181_v23 }
  0x31   : > { %2097 = vmatmul.mubr.msk.bf16.vlgmr.msra.gmra.mxu0 %vm287_vm0, %v2303_v12 }
  0x32   : > { %2105 = vmatmul.mubr.msk.bf16.vlgmr.msra.gmra.mxu1 %vm287_vm0, %v2303_v12  ;;  %2109 = vmatpush3.bf16.msra.mxu0 %v2180_v22 }
  0x33   : > { %2117 = vmatpush3.bf16.msra.mxu1 %v2181_v23  ;;  %2110 = vmatprep.subr.bf16.mxu0 %v2182_v24 }
  0x34   : > { %2118 = vmatprep.subr.bf16.mxu1 %v2183_v25  ;;  %2112 = vmatprep.mubr.msk.bf16.mxu0 %vm287_vm0, %v2301_v10 }
  0x35   : > { %2120 = vmatprep.mubr.msk.bf16.mxu1 %vm287_vm0, %v2301_v10 }
  0x36   : > { %2111 = vmatpush3.bf16.msra.mxu0 %v2182_v24 }
  0x37   : > { %2119 = vmatpush3.bf16.msra.mxu1 %v2183_v25  ;;  %2124 = vmatprep.subr.bf16.mxu0 %v2184_v26 }
  0x38   : > { %2132 = vmatprep.subr.bf16.mxu1 %v2185_v27 }
  0x39   : > { %2113 = vmatmul.mubr.msk.bf16.vlgmr.msra.gmra.mxu0 %vm287_vm0, %v2303_v12 }
  0x3a   : > { %2121 = vmatmul.mubr.msk.bf16.vlgmr.msra.gmra.mxu1 %vm287_vm0, %v2303_v12  ;;  %2125 = vmatpush3.bf16.msra.mxu0 %v2184_v26 }
  0x3b   : > { %2133 = vmatpush3.bf16.msra.mxu1 %v2185_v27  ;;  %2126 = vmatprep.subr.bf16.mxu0 %v2186_v28 }
  0x3c   : > { %2134 = vmatprep.subr.bf16.mxu1 %v2187_v29  ;;  %2128 = vmatprep.mubr.msk.bf16.mxu0 %vm287_vm0, %v2301_v10 }
  0x3d   : > { %2136 = vmatprep.mubr.msk.bf16.mxu1 %vm287_vm0, %v2301_v10 }
  0x3e   : > { %2127 = vmatpush3.bf16.msra.mxu0 %v2186_v28 }
  0x3f   : > { %2135 = vmatpush3.bf16.msra.mxu1 %v2187_v29 }
  0x41   : > { %2129 = vmatmul.mubr.msk.bf16.vlgmr.msra.gmra.mxu0 %vm287_vm0, %v2303_v12 }
  0x42   : > { %2137 = vmatmul.mubr.msk.bf16.vlgmr.msra.gmra.mxu1 %vm287_vm0, %v2303_v12 }
  0xd9   : > { %v2050_v30 = vpop.f32.mrf.mxu0 }
  0xda   : > { %v2058_v31 = vpop.f32.mrf.mxu1  ;;  %v1947_v32 = vpack.c.bf16 %v2050_v30, %v2050_v30 }
  0xdb   : > { %v1951_v33 = vpack.c.bf16 %v2058_v31, %v2058_v31  ;;  %v328_v34 = vpop.f32.mrf.mxu0 }
  0xdc   : > { %v414_v35 = vpop.f32.mrf.mxu1  ;;  %362 = vst.msk [vmem:[%s2408_s7 + $0x8] sm:$0xf] %vm359_vm1, %v1947_v32  ;;  %v1945_v36 = vpack.c.bf16 %v328_v34, %v328_v34 }
  0xdd   : > { %447 = vst.msk [vmem:[%s2413_s8 + $0x8] sm:$0xf] %vm359_vm1, %v1951_v33  ;;  %v1949_v37 = vpack.c.bf16 %v414_v35, %v414_v35  ;;  %v2051_v38 = vpop.f32.mrf.mxu0 }
  0xde   : > { %v2059_v39 = vpop.f32.mrf.mxu1  ;;  %360 = vst.msk [vmem:[%s2408_s7] sm:$0xf] %vm359_vm1, %v1945_v36  ;;  %v1948_v40 = vpack.c.bf16 %v2051_v38, %v2051_v38 }
  0xdf   : > { %445 = vst.msk [vmem:[%s2413_s8] sm:$0xf] %vm359_vm1, %v1949_v37  ;;  %v1952_v41 = vpack.c.bf16 %v2059_v39, %v2059_v39  ;;  %v331_v42 = vpop.f32.mrf.mxu0 }
  0xe0   : > { %v417_v43 = vpop.f32.mrf.mxu1  ;;  %363 = vst.msk [vmem:[%s2408_s7 + $0xc] sm:$0xf] %vm359_vm1, %v1948_v40  ;;  %v1946_v44 = vpack.c.bf16 %v331_v42, %v331_v42 }
  0xe1   : > { %448 = vst.msk [vmem:[%s2413_s8 + $0xc] sm:$0xf] %vm359_vm1, %v1952_v41  ;;  %v1950_v45 = vpack.c.bf16 %v417_v43, %v417_v43  ;;  %v2066_v46 = vpop.f32.mrf.mxu0 }
  0xe2   : > { %v2074_v47 = vpop.f32.mrf.mxu1  ;;  %361 = vst.msk [vmem:[%s2408_s7 + $0x4] sm:$0xf] %vm359_vm1, %v1946_v44  ;;  %v1955_v48 = vpack.c.bf16 %v2066_v46, %v2066_v46 }
  0xe3   : > { %446 = vst.msk [vmem:[%s2413_s8 + $0x4] sm:$0xf] %vm359_vm1, %v1950_v45  ;;  %v1959_v49 = vpack.c.bf16 %v2074_v47, %v2074_v47  ;;  %v499_v50 = vpop.f32.mrf.mxu0 }
  0xe4   : > { %v585_v51 = vpop.f32.mrf.mxu1  ;;  %532 = vst.msk [vmem:[%s2430_s21 + $0x8] sm:$0xf] %vm359_vm1, %v1955_v48  ;;  %v1953_v52 = vpack.c.bf16 %v499_v50, %v499_v50 }
  0xe5   : > { %1804 = vst.msk [vmem:[%s2408_s7 + $0x18] sm:$0xf] %vm359_vm1, %v1959_v49  ;;  %v1957_v53 = vpack.c.bf16 %v585_v51, %v585_v51  ;;  %v2067_v54 = vpop.f32.mrf.mxu0 }
  0xe6   : > { %v2075_v55 = vpop.f32.mrf.mxu1  ;;  %530 = vst.msk [vmem:[%s2430_s21] sm:$0xf] %vm359_vm1, %v1953_v52  ;;  %v1956_v56 = vpack.c.bf16 %v2067_v54, %v2067_v54 }
  0xe7   : > { %1802 = vst.msk [vmem:[%s2408_s7 + $0x10] sm:$0xf] %vm359_vm1, %v1957_v53  ;;  %v1960_v57 = vpack.c.bf16 %v2075_v55, %v2075_v55  ;;  %v502_v58 = vpop.f32.mrf.mxu0 }
  0xe8   : > { %v588_v59 = vpop.f32.mrf.mxu1  ;;  %533 = vst.msk [vmem:[%s2430_s21 + $0xc] sm:$0xf] %vm359_vm1, %v1956_v56  ;;  %v1954_v60 = vpack.c.bf16 %v502_v58, %v502_v58 }
  0xe9   : > { %1805 = vst.msk [vmem:[%s2408_s7 + $0x1c] sm:$0xf] %vm359_vm1, %v1960_v57  ;;  %v1958_v61 = vpack.c.bf16 %v588_v59, %v588_v59  ;;  %v2082_v62 = vpop.f32.mrf.mxu0 }
  0xea   : > { %v2090_v63 = vpop.f32.mrf.mxu1  ;;  %531 = vst.msk [vmem:[%s2430_s21 + $0x4] sm:$0xf] %vm359_vm1, %v1954_v60  ;;  %v1963_v0 = vpack.c.bf16 %v2082_v62, %v2082_v62  ;;  %v1351_v62 = vld [vmem:[%s2408_s7] sm:$0xff] (%p2272_p4)  }
  0xeb   : > { %1803 = vst.msk [vmem:[%s2408_s7 + $0x14] sm:$0xf] %vm359_vm1, %v1958_v61  ;;  %v1967_v1 = vpack.c.bf16 %v2090_v63, %v2090_v63  ;;  %v672_v2 = vpop.f32.mrf.mxu0  ;;  %v1355_v63 = vld [vmem:[%s2408_s7 + $0x8] sm:$0xff] (%p2272_p4)   ;;  %1352 = vst [vmem:[%s1334_s12] sm:$0xff] (%p2272_p4), %v1351_v62  }
  0xec   : > { %v759_v3 = vpop.f32.mrf.mxu1  ;;  %1820 = vst.msk [vmem:[%s2413_s8 + $0x18] sm:$0xf] %vm359_vm1, %v1963_v0  ;;  %v1961_v4 = vpack.c.bf16 %v672_v2, %v672_v2  ;;  %1356 = vst [vmem:[%s1334_s12 + $0x8] sm:$0xff] (%p2272_p4), %v1355_v63  }
  0xed   : > { %1836 = vst.msk [vmem:[%s2430_s21 + $0x18] sm:$0xf] %vm359_vm1, %v1967_v1  ;;  %v1965_v5 = vpack.c.bf16 %v759_v3, %v759_v3  ;;  %v2083_v6 = vpop.f32.mrf.mxu0 }
  0xee   : > { %v2091_v7 = vpop.f32.mrf.mxu1  ;;  %1818 = vst.msk [vmem:[%s2413_s8 + $0x10] sm:$0xf] %vm359_vm1, %v1961_v4  ;;  %v1964_v8 = vpack.c.bf16 %v2083_v6, %v2083_v6 }
  0xef   : > { %1834 = vst.msk [vmem:[%s2430_s21 + $0x10] sm:$0xf] %vm359_vm1, %v1965_v5  ;;  %v1968_v9 = vpack.c.bf16 %v2091_v7, %v2091_v7  ;;  %v675_v10 = vpop.f32.mrf.mxu0 }
  0xf0   : > { %v762_v11 = vpop.f32.mrf.mxu1  ;;  %1821 = vst.msk [vmem:[%s2413_s8 + $0x1c] sm:$0xf] %vm359_vm1, %v1964_v8  ;;  %v1962_v12 = vpack.c.bf16 %v675_v10, %v675_v10  ;;  %v1363_v1 = vld [vmem:[%s2408_s7 + $0x18] sm:$0xff] (%p2272_p4)  }
  0xf1   : > { %1837 = vst.msk [vmem:[%s2430_s21 + $0x1c] sm:$0xf] %vm359_vm1, %v1968_v9  ;;  %v1966_v13 = vpack.c.bf16 %v762_v11, %v762_v11  ;;  %v2098_v14 = vpop.f32.mrf.mxu0  ;;  %1364 = vst [vmem:[%s1334_s12 + $0x28] sm:$0xff] (%p2272_p4), %v1363_v1  }
  0xf2   : > { %v2106_v15 = vpop.f32.mrf.mxu1  ;;  %1819 = vst.msk [vmem:[%s2413_s8 + $0x14] sm:$0xf] %vm359_vm1, %v1962_v12  ;;  %v1971_v16 = vpack.c.bf16 %v2098_v14, %v2098_v14  ;;  %v1359_v0 = vld [vmem:[%s2408_s7 + $0x10] sm:$0xff] (%p2272_p4)  }
  0xf3   : > { %1835 = vst.msk [vmem:[%s2430_s21 + $0x14] sm:$0xf] %vm359_vm1, %v1966_v13  ;;  %v1975_v17 = vpack.c.bf16 %v2106_v15, %v2106_v15  ;;  %v846_v18 = vpop.f32.mrf.mxu0  ;;  %1360 = vst [vmem:[%s1334_s12 + $0x20] sm:$0xff] (%p2272_p4), %v1359_v0  }
  0xf4   : > { %v933_v19 = vpop.f32.mrf.mxu1  ;;  %1852 = vst.msk [vmem:[%s2408_s7 + $0x28] sm:$0xf] %vm359_vm1, %v1971_v16  ;;  %v1969_v20 = vpack.c.bf16 %v846_v18, %v846_v18 }
  0xf5   : > { %1868 = vst.msk [vmem:[%s2413_s8 + $0x28] sm:$0xf] %vm359_vm1, %v1975_v17  ;;  %v1973_v21 = vpack.c.bf16 %v933_v19, %v933_v19  ;;  %v2099_v22 = vpop.f32.mrf.mxu0 }
  0xf6   : > { %v2107_v23 = vpop.f32.mrf.mxu1  ;;  %1850 = vst.msk [vmem:[%s2408_s7 + $0x20] sm:$0xf] %vm359_vm1, %v1969_v20  ;;  %v1972_v24 = vpack.c.bf16 %v2099_v22, %v2099_v22 }
  0xf7   : > { %1866 = vst.msk [vmem:[%s2413_s8 + $0x20] sm:$0xf] %vm359_vm1, %v1973_v21  ;;  %v1976_v25 = vpack.c.bf16 %v2107_v23, %v2107_v23  ;;  %v849_v26 = vpop.f32.mrf.mxu0 }
  0xf8   : > { %v936_v27 = vpop.f32.mrf.mxu1  ;;  %1853 = vst.msk [vmem:[%s2408_s7 + $0x2c] sm:$0xf] %vm359_vm1, %v1972_v24  ;;  %v1970_v28 = vpack.c.bf16 %v849_v26, %v849_v26 }
  0xf9   : > { %1869 = vst.msk [vmem:[%s2413_s8 + $0x2c] sm:$0xf] %vm359_vm1, %v1976_v25  ;;  %v1974_v29 = vpack.c.bf16 %v936_v27, %v936_v27  ;;  %v2114_v30 = vpop.f32.mrf.mxu0 }
  0xfa   : > { %v2122_v31 = vpop.f32.mrf.mxu1  ;;  %1851 = vst.msk [vmem:[%s2408_s7 + $0x24] sm:$0xf] %vm359_vm1, %v1970_v28  ;;  %v1979_v32 = vpack.c.bf16 %v2114_v30, %v2114_v30 }
  0xfb   : > { %1867 = vst.msk [vmem:[%s2413_s8 + $0x24] sm:$0xf] %vm359_vm1, %v1974_v29  ;;  %v1983_v33 = vpack.c.bf16 %v2122_v31, %v2122_v31  ;;  %v1020_v34 = vpop.f32.mrf.mxu0 }
  0xfc   : > { %v1107_v35 = vpop.f32.mrf.mxu1  ;;  %1884 = vst.msk [vmem:[%s2430_s21 + $0x28] sm:$0xf] %vm359_vm1, %v1979_v32  ;;  %v1977_v36 = vpack.c.bf16 %v1020_v34, %v1020_v34 }
  0xfd   : > { %1900 = vst.msk [vmem:[%s2408_s7 + $0x38] sm:$0xf] %vm359_vm1, %v1983_v33  ;;  %v1981_v37 = vpack.c.bf16 %v1107_v35, %v1107_v35  ;;  %v2115_v38 = vpop.f32.mrf.mxu0 }
  0xfe   : > { %v2123_v39 = vpop.f32.mrf.mxu1  ;;  %1882 = vst.msk [vmem:[%s2430_s21 + $0x20] sm:$0xf] %vm359_vm1, %v1977_v36  ;;  %v1980_v40 = vpack.c.bf16 %v2115_v38, %v2115_v38 }
  0xff   : > { %1898 = vst.msk [vmem:[%s2408_s7 + $0x30] sm:$0xf] %vm359_vm1, %v1981_v37  ;;  %v1984_v41 = vpack.c.bf16 %v2123_v39, %v2123_v39  ;;  %v1023_v42 = vpop.f32.mrf.mxu0  ;;  %v1371_v3 = vld [vmem:[%s2408_s7 + $0x28] sm:$0xff] (%p2272_p4)  }
 0x100   : > { %v1110_v43 = vpop.f32.mrf.mxu1  ;;  %1885 = vst.msk [vmem:[%s2430_s21 + $0x2c] sm:$0xf] %vm359_vm1, %v1980_v40  ;;  %v1978_v44 = vpack.c.bf16 %v1023_v42, %v1023_v42  ;;  %1372 = vst [vmem:[%s1334_s12 + $0x48] sm:$0xff] (%p2272_p4), %v1371_v3  }
 0x101   : > { %1901 = vst.msk [vmem:[%s2408_s7 + $0x3c] sm:$0xf] %vm359_vm1, %v1984_v41  ;;  %v1982_v45 = vpack.c.bf16 %v1110_v43, %v1110_v43  ;;  %v2130_v46 = vpop.f32.mrf.mxu0  ;;  %v1367_v2 = vld [vmem:[%s2408_s7 + $0x20] sm:$0xff] (%p2272_p4)  }
 0x102   : > { %v2138_v47 = vpop.f32.mrf.mxu1  ;;  %1883 = vst.msk [vmem:[%s2430_s21 + $0x24] sm:$0xf] %vm359_vm1, %v1978_v44  ;;  %v1987_v48 = vpack.c.bf16 %v2130_v46, %v2130_v46  ;;  %1368 = vst [vmem:[%s1334_s12 + $0x40] sm:$0xff] (%p2272_p4), %v1367_v2  }
 0x103   : > { %1899 = vst.msk [vmem:[%s2408_s7 + $0x34] sm:$0xf] %vm359_vm1, %v1982_v45  ;;  %v1991_v49 = vpack.c.bf16 %v2138_v47, %v2138_v47  ;;  %v1194_v50 = vpop.f32.mrf.mxu0 }
 0x104   : > { %v1281_v51 = vpop.f32.mrf.mxu1  ;;  %1916 = vst.msk [vmem:[%s2413_s8 + $0x38] sm:$0xf] %vm359_vm1, %v1987_v48  ;;  %v1985_v52 = vpack.c.bf16 %v1194_v50, %v1194_v50 }
 0x105   : > { %1932 = vst.msk [vmem:[%s2430_s21 + $0x38] sm:$0xf] %vm359_vm1, %v1991_v49  ;;  %v1989_v53 = vpack.c.bf16 %v1281_v51, %v1281_v51  ;;  %v2131_v54 = vpop.f32.mrf.mxu0 }
 0x106   : > { %v2139_v55 = vpop.f32.mrf.mxu1  ;;  %1914 = vst.msk [vmem:[%s2413_s8 + $0x30] sm:$0xf] %vm359_vm1, %v1985_v52  ;;  %v1988_v56 = vpack.c.bf16 %v2131_v54, %v2131_v54 }
 0x107   : > { %1930 = vst.msk [vmem:[%s2430_s21 + $0x30] sm:$0xf] %vm359_vm1, %v1989_v53  ;;  %v1992_v57 = vpack.c.bf16 %v2139_v55, %v2139_v55  ;;  %v1197_v58 = vpop.f32.mrf.mxu0  ;;  %1331 = sbr.rel (!%p2272_p4) target bundleno = 268 (0x10c), region = 40 }
 0x108   : > { %v1284_v59 = vpop.f32.mrf.mxu1  ;;  %1917 = vst.msk [vmem:[%s2413_s8 + $0x3c] sm:$0xf] %vm359_vm1, %v1988_v56  ;;  %v1986_v60 = vpack.c.bf16 %v1197_v58, %v1197_v58  ;;  %v1379_v5 = vld [vmem:[%s2408_s7 + $0x38] sm:$0xff] (%p2272_p4)  }
 0x109   : > { %1933 = vst.msk [vmem:[%s2430_s21 + $0x3c] sm:$0xf] %vm359_vm1, %v1992_v57  ;;  %v1990_v61 = vpack.c.bf16 %v1284_v59, %v1284_v59  ;;  %1380 = vst [vmem:[%s1334_s12 + $0x68] sm:$0xff] (%p2272_p4), %v1379_v5  }
 0x10a   : > { %1915 = vst.msk [vmem:[%s2413_s8 + $0x34] sm:$0xf] %vm359_vm1, %v1986_v60  ;;  %v1375_v4 = vld [vmem:[%s2408_s7 + $0x30] sm:$0xff] (%p2272_p4)  }
 0x10b   : > { %1931 = vst.msk [vmem:[%s2430_s21 + $0x34] sm:$0xf] %vm359_vm1, %v1990_v61  ;;  %1376 = vst [vmem:[%s1334_s12 + $0x60] sm:$0xff] (%p2272_p4), %v1375_v4  }
 0x10c PF: > { %1438 = sbr.rel (!%p2272_p4) target bundleno = 275 (0x113), region = 81  ;;  %s1994_s13 = sshll.u32 (%p2272_p4), %s2260_s24, 4  ;;  %v1458_v6 = vld [vmem:[%s2413_s8] sm:$0xff] (%p2272_p4)   ;;  %v1462_v7 = vld [vmem:[%s2413_s8 + $0x8] sm:$0xff] (%p2272_p4)   ;;  %v1466_v8 = vld [vmem:[%s2413_s8 + $0x10] sm:$0xff] (%p2272_p4)  }
 0x10d   : > { %s1441_s16 = scalar_lea.vmem (%p2272_p4), %s2569_s5, %s1994_s13  ;;  %v1470_v9 = vld [vmem:[%s2413_s8 + $0x18] sm:$0xff] (%p2272_p4)   ;;  %v1474_v10 = vld [vmem:[%s2413_s8 + $0x20] sm:$0xff] (%p2272_p4)   ;;  %v1478_v11 = vld [vmem:[%s2413_s8 + $0x28] sm:$0xff] (%p2272_p4)  }
 0x10e   : > { %1459 = vst [vmem:[%s1441_s16] sm:$0xff] (%p2272_p4), %v1458_v6   ;;  %1463 = vst [vmem:[%s1441_s16 + $0x8] sm:$0xff] (%p2272_p4), %v1462_v7  }
 0x10f   : > { %1467 = vst [vmem:[%s1441_s16 + $0x20] sm:$0xff] (%p2272_p4), %v1466_v8   ;;  %1471 = vst [vmem:[%s1441_s16 + $0x28] sm:$0xff] (%p2272_p4), %v1470_v9   ;;  %v1486_v13 = vld [vmem:[%s2413_s8 + $0x38] sm:$0xff] (%p2272_p4)  }
 0x110   : > { %1475 = vst [vmem:[%s1441_s16 + $0x40] sm:$0xff] (%p2272_p4), %v1474_v10   ;;  %1479 = vst [vmem:[%s1441_s16 + $0x48] sm:$0xff] (%p2272_p4), %v1478_v11  }
 0x111   : > { %v1482_v12 = vld [vmem:[%s2413_s8 + $0x30] sm:$0xff]   ;;  %1487 = vst [vmem:[%s1441_s16 + $0x68] sm:$0xff] %v1486_v13  }
 0x112   : > { %1483 = vst [vmem:[%s1441_s16 + $0x60] sm:$0xff] %v1482_v12  }
 0x113 PF: > { %1545 = sbr.rel (!%p2272_p4) target bundleno = 281 (0x119), region = 122  ;;  %s1995_s17 = sshll.u32 (%p2272_p4), %s2260_s24, 4  ;;  %v1565_v14 = vld [vmem:[%s2430_s21] sm:$0xff] (%p2272_p4)   ;;  %v1569_v15 = vld [vmem:[%s2430_s21 + $0x8] sm:$0xff] (%p2272_p4)   ;;  %v1573_v16 = vld [vmem:[%s2430_s21 + $0x10] sm:$0xff] (%p2272_p4)  }
 0x114   : > { %s1548_s20 = scalar_lea.vmem (%p2272_p4), %s2570_s6, %s1995_s17  ;;  %v1577_v17 = vld [vmem:[%s2430_s21 + $0x18] sm:$0xff] (%p2272_p4)   ;;  %v1581_v18 = vld [vmem:[%s2430_s21 + $0x20] sm:$0xff] (%p2272_p4)   ;;  %v1585_v19 = vld [vmem:[%s2430_s21 + $0x28] sm:$0xff] (%p2272_p4)  }
 0x115   : > { %1566 = vst [vmem:[%s1548_s20] sm:$0xff] (%p2272_p4), %v1565_v14   ;;  %1570 = vst [vmem:[%s1548_s20 + $0x8] sm:$0xff] (%p2272_p4), %v1569_v15   ;;  %v1589_v20 = vld [vmem:[%s2430_s21 + $0x30] sm:$0xff] (%p2272_p4)   ;;  %v1593_v21 = vld [vmem:[%s2430_s21 + $0x38] sm:$0xff] (%p2272_p4)  }
 0x116   : > { %1574 = vst [vmem:[%s1548_s20 + $0x20] sm:$0xff] (%p2272_p4), %v1573_v16   ;;  %1578 = vst [vmem:[%s1548_s20 + $0x28] sm:$0xff] (%p2272_p4), %v1577_v17  }
 0x117   : > { %1582 = vst [vmem:[%s1548_s20 + $0x40] sm:$0xff] (%p2272_p4), %v1581_v18   ;;  %1586 = vst [vmem:[%s1548_s20 + $0x48] sm:$0xff] (%p2272_p4), %v1585_v19  }
 0x118   : > { %1590 = vst [vmem:[%s1548_s20 + $0x60] sm:$0xff] %v1589_v20   ;;  %1594 = vst [vmem:[%s1548_s20 + $0x68] sm:$0xff] %v1593_v21  }
 0x119 PF: > { %p14_p8 = scmp.ge.s32.totalorder %s2262_s25, 4   ;;  %s2572_s21 = smov %s2206_s22 }
 0x11a   : > { %s2573_s22 = smov %s2270_s28  ;;  %s2574_s23 = smov %s2262_s25 }
 0x11b   :  { %16 = sbr.rel (!%p14_p8) target bundleno = 2 (0x2), region = 231 }

</bundles_post_ra>
